<compile_context>
chip_gen: v5e
topology: v5e:2x2
jax: 0.10.0
libtpu: 0.0.40
codegen_flags: <defaults>
</compile_context>

<pallas_src>
import functools

import jax
import jax.numpy as jnp
from jax import lax
from jax.experimental import pallas as pl
from jax.experimental.pallas import tpu as pltpu

EPS = 1e-5
LANE = 128       # TPU lane width: channel padding target
ROW_STRIP = 8    # output rows per grid step for large feature maps (sublane aligned)


def _round_up(x, m):
    return (x + m - 1) // m * m


@functools.lru_cache(maxsize=None)
def _roll_sign():
    """One-off probe of pltpu.roll's sublane-rotation convention.

    Returns +1 if pltpu.roll(x, s, 0) == jnp.roll(x, s, 0), -1 if it rotates the other
    way, and 0 if this roll cannot be lowered (the conv kernel then falls back to plain
    value slicing, which is correct but pays a re-layout copy per tap)."""
    try:
        def k(x_ref, o_ref):
            o_ref[...] = pltpu.roll(x_ref[...], 1, 0)

        x = jnp.arange(32 * LANE, dtype=jnp.float32).reshape(32, LANE)
        y = jax.block_until_ready(
            pl.pallas_call(k, out_shape=jax.ShapeDtypeStruct((32, LANE), jnp.float32))(x))
        if bool(jnp.array_equal(y, jnp.roll(x, 1, axis=0))):
            return 1
        if bool(jnp.array_equal(y, jnp.roll(x, -1, axis=0))):
            return -1
    except Exception:
        pass
    return 0


# --------------------------------------------------------------------------- #
# Kernel 1: fused Conv2d(kxk, valid, no bias) -> folded BN -> ReLU  (MXU path)
# --------------------------------------------------------------------------- #
def _conv_bn_relu_kernel(x_ref, w_ref, b_ref, o_ref, acc_ref, *,
                         K, Win, R, extra, roll_sign):
    # x_ref  : (1, L_pad, Cin_p)   f32 row-major flattened, zero-padded NHWC input
    # w_ref  : (K*K, Cin_p, Tco)   bf16 per-tap weights, BN scale folded in
    # b_ref  : (1, Tco)            f32 folded BN bias
    # o_ref  : (1, R*Win, Tco)     f32 flat strip of R output rows (cols >= Wout and
    #                              rows >= Hout are junk, never consumed downstream)
    # acc_ref: (R*Win, Tco)        f32 VMEM accumulator (keeps vregs free for operands)
    s = pl.program_id(2)
    rows = R * Win
    slab_len = rows + extra
    base = pl.multiple_of(s * rows, 8)            # rows % 8 == 0 whenever n_strips > 1

    state = {"first": True}

    def accum(val):
        if state["first"]:
            acc_ref[...] = val
            state["first"] = False
        else:
            acc_ref[...] += val

    for dy in range(K):
        # One dynamic load per filter row; the dx shifts happen in-register below.
        slab = x_ref[0, pl.ds(base + dy * Win, slab_len), :]       # f32

        def window(dx):
            if dx == 0:
                w = slab[:rows]
            elif roll_sign != 0:
                # result[i] == slab[i + dx]; the consumed [:rows] region never wraps.
                shift = (slab_len - dx) if roll_sign > 0 else dx
                w = pltpu.roll(slab, shift, 0)[:rows]
            else:
                w = slab[dx:dx + rows]            # safe fallback: unaligned value slice
            return w.astype(jnp.bfloat16)         # bf16 MXU operand, f32 accumulate

        # Pack two dx-taps per MXU push: contraction depth 2*Cin_p = 256 fills the
        # 2x256x256 MXUs of v6e/v7x; on v5e it simply runs as two 128-deep passes.
        for p in range(K // 2):
            dx = 2 * p
            lhs = jnp.concatenate([window(dx), window(dx + 1)], axis=1)
            rhs = jnp.concatenate([w_ref[dy * K + dx], w_ref[dy * K + dx + 1]], axis=0)
            accum(jnp.dot(lhs, rhs, preferred_element_type=jnp.float32))
        if K % 2:
            dx = K - 1
            accum(jnp.dot(window(dx), w_ref[dy * K + dx],
                          preferred_element_type=jnp.float32))

    # bias + ReLU epilogue in f32 (BN scale already folded into the weights).
    o_ref[0] = jnp.maximum(acc_ref[...] + b_ref[...], 0.0).astype(o_ref.dtype)


def conv_bn_relu(x_nhwc, w_hwio_folded, bias):
    """Fused conv(valid, no bias) + folded-BN + ReLU.

    Returns (out_flat, Hout, Wout, Hout_pad) with out_flat of shape
    (B, Hout_pad*Win, Cout_p); after reshaping to (B, Hout_pad, Win, Cout_p) the valid
    region is [:, :Hout, :Wout, :Cout] (everything else is junk/zero)."""
    B, Hin, Win, Cin = x_nhwc.shape
    K = w_hwio_folded.shape[0]
    Cout = w_hwio_folded.shape[3]
    Cin_p = _round_up(Cin, LANE)
    Cout_p = _round_up(Cout, LANE)
    # Fill the MXU output width (256 on v6e/v7x) when Cout_p allows it.
    tile_cout = 2 * LANE if Cout_p % (2 * LANE) == 0 else LANE
    n_ct = Cout_p // tile_cout
    Hout, Wout = Hin - K + 1, Win - K + 1
    # Small (template) branches get a single full-height strip: no 8-row padding waste.
    R = ROW_STRIP if Hout > ROW_STRIP else Hout
    Hout_pad = _round_up(Hout, R)
    n_strips = Hout_pad // R
    rows = R * Win
    extra = _round_up(K - 1, 8)
    L_pad = _round_up((Hout_pad + K - 1) * Win + extra, 8)

    # Lane-dense channel pad, flatten spatial row-major, zero-pad the flat axis so every
    # strip's tap window stays in bounds.
    x = jnp.pad(x_nhwc, ((0, 0), (0, 0), (0, 0), (0, Cin_p - Cin)))
    x = x.reshape(B, Hin * Win, Cin_p)
    x = jnp.pad(x, ((0, 0), (0, L_pad - Hin * Win), (0, 0)))

    w = jnp.pad(w_hwio_folded,
                ((0, 0), (0, 0), (0, Cin_p - Cin), (0, Cout_p - Cout)))
    w = w.reshape(K * K, Cin_p, Cout_p).astype(jnp.bfloat16)     # bf16 MXU operand
    b = jnp.pad(bias, (0, Cout_p - Cout)).reshape(1, Cout_p)

    kern = functools.partial(_conv_bn_relu_kernel, K=K, Win=Win, R=R, extra=extra,
                             roll_sign=_roll_sign())
    out = pl.pallas_call(
        kern,
        out_shape=jax.ShapeDtypeStruct((B, Hout_pad * Win, Cout_p), jnp.float32),
        grid=(B, n_ct, n_strips),
        in_specs=[
            pl.BlockSpec((1, L_pad, Cin_p), lambda b_, ct, s_: (b_, 0, 0)),
            pl.BlockSpec((K * K, Cin_p, tile_cout), lambda b_, ct, s_: (0, 0, ct)),
            pl.BlockSpec((1, tile_cout), lambda b_, ct, s_: (0, ct)),
        ],
        out_specs=pl.BlockSpec((1, rows, tile_cout),
                               lambda b_, ct, s_: (b_, s_, ct)),
        scratch_shapes=[pltpu.VMEM((rows, tile_cout), jnp.float32)],
        compiler_params=pltpu.CompilerParams(
            dimension_semantics=("parallel", "parallel", "parallel")),
    )(x, w, b)
    return out, Hout, Wout, Hout_pad


# --------------------------------------------------------------------------- #
# Kernel 2: depthwise cross-correlation (per-batch/channel sliding window, VPU)
# --------------------------------------------------------------------------- #
def _xcorr_kernel(x_ref, k_ref, o_ref, *, Hq, Wq, Ro, Wo):
    # x_ref : (1, Hx, Wp, Ct)  zero-padded search feature (padding done in the wrapper)
    # k_ref : (1, Hq, Wq, Ct)  template feature == depthwise filter
    # o_ref : (1, Ro, Wo, Ct)  one strip of Ro output rows
    s = pl.program_id(2)
    row0 = s * Ro
    kv = k_ref[0]                                     # hoisted: one load, Hq*Wq reuses
    acc = jnp.zeros(o_ref.shape[1:], jnp.float32)
    for u in range(Hq):
        for v in range(Wq):
            patch = x_ref[0, pl.ds(row0 + u, Ro), v:v + Wo, :]      # (Ro, Wo, Ct)
            acc = acc + patch * kv[u:u + 1, v:v + 1, :]             # bcast (1, 1, Ct)
    o_ref[0] = acc.astype(o_ref.dtype)


def xcorr_depthwise_pallas(search_valid, kernel_valid):
    """Depthwise xcorr with padding = Hq // 2 (matches F.conv2d(groups=B*C)).

    search_valid: (B, Hs, Ws, Cp) f32;  kernel_valid: (B, Hq, Wq, Cp) f32.
    Returns (out, Ho, Wo) with out of shape (B, Ho_pad, Wo, Cp)."""
    B, Hs, Ws, Cp = search_valid.shape
    _, Hq, Wq, _ = kernel_valid.shape
    pad = Hq // 2
    Hp, Wp = Hs + 2 * pad, Ws + 2 * pad
    Ho, Wo = Hp - Hq + 1, Wp - Wq + 1
    Ro = ROW_STRIP if Ho > ROW_STRIP else Ho
    Ho_pad = _round_up(Ho, Ro)
    n_strips = Ho_pad // Ro
    Hx = Ho_pad + Hq - 1             # tall enough for every strip's taps
    n_ct = Cp // LANE

    # Materialize the padded search layout once (one cheap XLA pad); this removes the
    # persistent VMEM scratch, the in-kernel zero fill and the VMEM->VMEM copy, and lets
    # every grid axis be "parallel" (both v7x TensorCores usable even at batch 1).
    xpad = jnp.pad(search_valid,
                   ((0, 0), (pad, Hx - pad - Hs), (pad, pad), (0, 0)))

    kern = functools.partial(_xcorr_kernel, Hq=Hq, Wq=Wq, Ro=Ro, Wo=Wo)
    out = pl.pallas_call(
        kern,
        out_shape=jax.ShapeDtypeStruct((B, Ho_pad, Wo, Cp), jnp.float32),
        grid=(B, n_ct, n_strips),
        in_specs=[
            pl.BlockSpec((1, Hx, Wp, LANE), lambda b_, ct, s_: (b_, 0, 0, ct)),
            pl.BlockSpec((1, Hq, Wq, LANE), lambda b_, ct, s_: (b_, 0, 0, ct)),
        ],
        out_specs=pl.BlockSpec((1, Ro, Wo, LANE),
                               lambda b_, ct, s_: (b_, s_, 0, ct)),
        compiler_params=pltpu.CompilerParams(
            dimension_semantics=("parallel", "parallel", "parallel")),
    )(xpad, kernel_valid)
    return out, Ho, Wo


# --------------------------------------------------------------------------- #
# Full DepthwiseXCorr forward (NCHW in / NCHW out, like the PyTorch module)
# --------------------------------------------------------------------------- #
def depthwise_xcorr_forward(kernel_nchw, search_nchw, params):
    wk, gk, bk, mk, vk = params["kernel"]            # conv_kernel branch
    ws, gs, bs, ms, vs = params["search"]            # conv_search branch
    C = wk.shape[0]                                  # hidden channels

    # Fold eval-mode BatchNorm: scale into the conv weight, keep only the bias.
    sk = gk / jnp.sqrt(vk + EPS)
    ss = gs / jnp.sqrt(vs + EPS)
    wk_h = jnp.transpose(wk, (2, 3, 1, 0)) * sk      # OIHW -> HWIO, BN scale folded
    ws_h = jnp.transpose(ws, (2, 3, 1, 0)) * ss
    bk2 = bk - mk * sk
    bs2 = bs - ms * ss

    k_x = jnp.transpose(kernel_nchw, (0, 2, 3, 1))   # NCHW -> NHWC
    s_x = jnp.transpose(search_nchw, (0, 2, 3, 1))

    kf_flat, Hq, Wq, Hq_pad = conv_bn_relu(k_x, wk_h, bk2)
    sf_flat, Hs, Ws, Hs_pad = conv_bn_relu(s_x, ws_h, bs2)

    B = k_x.shape[0]
    Cp = kf_flat.shape[-1]
    kf = kf_flat.reshape(B, Hq_pad, k_x.shape[2], Cp)[:, :Hq, :Wq, :]
    sf = sf_flat.reshape(B, Hs_pad, s_x.shape[2], Cp)[:, :Hs, :Ws, :]

    feat, Ho, Wo = xcorr_depthwise_pallas(sf, kf)
    feat = feat[:, :Ho, :, :C]                       # drop row / channel padding
    return jnp.transpose(feat, (0, 3, 1, 2))         # back to NCHW


# --------------------------------------------------------------------------- #
# Pure-JAX reference (mirrors the PyTorch ops in NCHW, f32) for verification
# --------------------------------------------------------------------------- #
def _reference(kernel_nchw, search_nchw, params):
    def branch(x, w, gamma, beta, mean, var):
        y = lax.conv_general_dilated(
            x, w, (1, 1), "VALID", dimension_numbers=("NCHW", "OIHW", "NCHW"))
        y = (y - mean[None, :, None, None]) / jnp.sqrt(var[None, :, None, None] + EPS)
        y = y * gamma[None, :, None, None] + beta[None, :, None, None]
        return jnp.maximum(y, 0.0)

    kf = branch(kernel_nchw, *params["kernel"])
    sf = branch(search_nchw, *params["search"])
    B, C, Hq, Wq = kf.shape
    x = sf.reshape(1, B * C, sf.shape[2], sf.shape[3])
    k = kf.reshape(B * C, 1, Hq, Wq)
    pad = Hq // 2
    out = lax.conv_general_dilated(
        x, k, (1, 1), [(pad, pad), (pad, pad)],
        dimension_numbers=("NCHW", "OIHW", "NCHW"), feature_group_count=B * C)
    return out.reshape(B, C, out.shape[2], out.shape[3])


if __name__ == "__main__":
    B, Cin, Cout, K = 2, 4, 8, 3
    Hk = Wk = 8      # template ("kernel") input spatial
    Hs = Ws = 16     # search input spatial

    key = jax.random.PRNGKey(0)
    ks = jax.random.split(key, 12)

    def bn_params(k1, k2, k3, k4):
        gamma = 1.0 + 0.1 * jax.random.normal(k1, (Cout,), jnp.float32)
        beta = 0.1 * jax.random.normal(k2, (Cout,), jnp.float32)
        mean = 0.1 * jax.random.normal(k3, (Cout,), jnp.float32)
        var = jax.random.uniform(k4, (Cout,), jnp.float32, 0.5, 1.5)
        return gamma, beta, mean, var

    wk = 0.1 * jax.random.normal(ks[0], (Cout, Cin, K, K), jnp.float32)
    ws = 0.1 * jax.random.normal(ks[1], (Cout, Cin, K, K), jnp.float32)
    params = {
        "kernel": (wk,) + bn_params(ks[2], ks[3], ks[4], ks[5]),
        "search": (ws,) + bn_params(ks[6], ks[7], ks[8], ks[9]),
    }

    kernel_in = jax.random.normal(ks[10], (B, Cin, Hk, Wk), jnp.float32)
    search_in = jax.random.normal(ks[11], (B, Cin, Hs, Ws), jnp.float32)

    out = depthwise_xcorr_forward(kernel_in, search_in, params)
    out = jax.block_until_ready(out)

    ref = _reference(kernel_in, search_in, params)
    assert out.shape == ref.shape, (out.shape, ref.shape)
    # bf16 MXU operands (f32 accumulation) => bf16-level tolerance vs the f32 reference.
    max_err = float(jnp.max(jnp.abs(out - ref)))
    assert jnp.allclose(out, ref, rtol=5e-2, atol=5e-2), max_err
    print("KERNEL_OK")
</pallas_src>

<mosaic_0001>
module attributes {stable_mosaic.version = 11 : i64} {
  func.func @k(%arg0: memref<32x128xf32, #tpu.memory_space<vmem>>, %arg1: memref<32x128xf32, #tpu.memory_space<vmem>>) attributes {dimension_semantics = [], scalar_prefetch = 0 : i64, scratch_operands = 0 : i64, tpu.core_type = #tpu.core_type<tc>} {
    %c0 = arith.constant 0 : index
    %c0_0 = arith.constant 0 : index
    %0 = vector.load %arg0[%c0, %c0_0] : memref<32x128xf32, #tpu.memory_space<vmem>>, vector<32x128xf32>
    %c1_i32 = arith.constant 1 : i32
    %1 = tpu.dynamic_rotate %0 by %c1_i32 dim 0 : vector<32x128xf32>, i32 -> vector<32x128xf32>
    %c0_1 = arith.constant 0 : index
    %c0_2 = arith.constant 0 : index
    %2 = vector.load %arg1[%c0_1, %c0_2] : memref<32x128xf32, #tpu.memory_space<vmem>>, vector<32x128xf32>
    tpu.vector_store %arg1[%c0_1, %c0_2], %1 {strides = array<i32>} : memref<32x128xf32, #tpu.memory_space<vmem>>, vector<32x128xf32>,
    return
  }
}

module attributes {stable_mosaic.version = 11 : i64} {
  func.func @_conv_bn_relu_kernel(%arg0: i32, %arg1: i32, %arg2: i32, %arg3: memref<1x72x128xf32, #tpu.memory_space<vmem>>, %arg4: memref<9x128x128xbf16, #tpu.memory_space<vmem>>, %arg5: memref<1x128xf32, #tpu.memory_space<vmem>>, %arg6: memref<1x48x128xf32, #tpu.memory_space<vmem>>, %arg7: memref<48x128xf32, #tpu.memory_space<vmem>>) attributes {dimension_semantics = [#tpu.dimension_semantics<parallel>, #tpu.dimension_semantics<parallel>, #tpu.dimension_semantics<parallel>], iteration_bounds = array<i64: 2, 1, 1>, scalar_prefetch = 0 : i64, scratch_operands = 1 : i64, tpu.core_type = #tpu.core_type<tc>, window_params = [{transform_indices = @transform_0, window_bounds = array<i64: 1, 72, 128>}, {transform_indices = @transform_1, window_bounds = array<i64: 9, 128, 128>}, {transform_indices = @transform_2, window_bounds = array<i64: 1, 128>}, {transform_indices = @transform_3, window_bounds = array<i64: 1, 48, 128>}]} {
    %c48_i32 = arith.constant 48 : i32
    %0 = arith.muli %arg2, %c48_i32 : i32
    %1 = tpu.assume_multiple %0, 8 : i32
    %c0_i32 = arith.constant 0 : i32
    %2 = arith.addi %1, %c0_i32 : i32
    %c0 = arith.constant 0 : index
    %3 = arith.index_cast %2 : i32 to index
    %c0_0 = arith.constant 0 : index
    %4 = vector.load %arg3[%c0, %3, %c0_0] : memref<1x72x128xf32, #tpu.memory_space<vmem>>, vector<1x56x128xf32>
    %5 = vector.shape_cast %4 : vector<1x56x128xf32> to vector<56x128xf32>
    %6 = vector.extract_strided_slice %5 {offsets = [0, 0], sizes = [48, 128], strides = [1, 1]} : vector<56x128xf32> to vector<48x128xf32>
    %7 = arith.truncf %6 : vector<48x128xf32> to vector<48x128xbf16>
    %8 = vector.extract_strided_slice %5 {offsets = [1, 0], sizes = [48, 128], strides = [1, 1]} : vector<56x128xf32> to vector<48x128xf32>
    %9 = arith.truncf %8 : vector<48x128xf32> to vector<48x128xbf16>
    %10 = tpu.concatenate %7, %9 in 1 : vector<48x128xbf16>, vector<48x128xbf16> -> vector<48x256xbf16>
    %c0_1 = arith.constant 0 : index
    %c0_2 = arith.constant 0 : index
    %c0_3 = arith.constant 0 : index
    %11 = vector.load %arg4[%c0_1, %c0_2, %c0_3] : memref<9x128x128xbf16, #tpu.memory_space<vmem>>, vector<1x128x128xbf16>
    %12 = vector.shape_cast %11 : vector<1x128x128xbf16> to vector<128x128xbf16>
    %c1 = arith.constant 1 : index
    %c0_4 = arith.constant 0 : index
    %c0_5 = arith.constant 0 : index
    %13 = vector.load %arg4[%c1, %c0_4, %c0_5] : memref<9x128x128xbf16, #tpu.memory_space<vmem>>, vector<1x128x128xbf16>
    %14 = vector.shape_cast %13 : vector<1x128x128xbf16> to vector<128x128xbf16>
    %15 = tpu.concatenate %12, %14 in 0 : vector<128x128xbf16>, vector<128x128xbf16> -> vector<256x128xbf16>
    %cst = arith.constant dense<0.000000e+00> : vector<48x128xf32>
    %16 = tpu.matmul %10, %15, %cst {dimension_numbers = #tpu.dot_dimension_numbers<[1], [0], [0], [1], [0, 0, 1, 1], [], []>} : vector<48x256xbf16>, vector<256x128xbf16>, vector<48x128xf32> -> vector<48x128xf32>
    %c0_6 = arith.constant 0 : index
    %c0_7 = arith.constant 0 : index
    %17 = vector.load %arg7[%c0_6, %c0_7] : memref<48x128xf32, #tpu.memory_space<vmem>>, vector<48x128xf32>
    tpu.vector_store %arg7[%c0_6, %c0_7], %16 {strides = array<i32>} : memref<48x128xf32, #tpu.memory_space<vmem>>, vector<48x128xf32>,
    %18 = vector.extract_strided_slice %5 {offsets = [2, 0], sizes = [48, 128], strides = [1, 1]} : vector<56x128xf32> to vector<48x128xf32>
    %19 = arith.truncf %18 : vector<48x128xf32> to vector<48x128xbf16>
    %c2 = arith.constant 2 : index
    %c0_8 = arith.constant 0 : index
    %c0_9 = arith.constant 0 : index
    %20 = vector.load %arg4[%c2, %c0_8, %c0_9] : memref<9x128x128xbf16, #tpu.memory_space<vmem>>, vector<1x128x128xbf16>
    %21 = vector.shape_cast %20 : vector<1x128x128xbf16> to vector<128x128xbf16>
    %cst_10 = arith.constant dense<0.000000e+00> : vector<48x128xf32>
    %22 = tpu.matmul %19, %21, %cst_10 {dimension_numbers = #tpu.dot_dimension_numbers<[1], [0], [0], [1], [0, 0, 1, 1], [], []>} : vector<48x128xbf16>, vector<128x128xbf16>, vector<48x128xf32> -> vector<48x128xf32>
    %c0_11 = arith.constant 0 : index
    %c0_12 = arith.constant 0 : index
    %23 = vector.load %arg7[%c0_11, %c0_12] : memref<48x128xf32, #tpu.memory_space<vmem>>, vector<48x128xf32>
    %24 = arith.addf %23, %22 : vector<48x128xf32>
    %c0_13 = arith.constant 0 : index
    %c0_14 = arith.constant 0 : index
    %25 = vector.load %arg7[%c0_13, %c0_14] : memref<48x128xf32, #tpu.memory_space<vmem>>, vector<48x128xf32>
    tpu.vector_store %arg7[%c0_13, %c0_14], %24 {strides = array<i32>} : memref<48x128xf32, #tpu.memory_space<vmem>>, vector<48x128xf32>,
    %c8_i32 = arith.constant 8 : i32
    %26 = arith.addi %1, %c8_i32 : i32
    %c0_15 = arith.constant 0 : index
    %27 = arith.index_cast %26 : i32 to index
    %c0_16 = arith.constant 0 : index
    %28 = vector.load %arg3[%c0_15, %27, %c0_16] : memref<1x72x128xf32, #tpu.memory_space<vmem>>, vector<1x56x128xf32>
    %29 = vector.shape_cast %28 : vector<1x56x128xf32> to vector<56x128xf32>
    %30 = vector.extract_strided_slice %29 {offsets = [0, 0], sizes = [48, 128], strides = [1, 1]} : vector<56x128xf32> to vector<48x128xf32>
    %31 = arith.truncf %30 : vector<48x128xf32> to vector<48x128xbf16>
    %32 = vector.extract_strided_slice %29 {offsets = [1, 0], sizes = [48, 128], strides = [1, 1]} : vector<56x128xf32> to vector<48x128xf32>
    %33 = arith.truncf %32 : vector<48x128xf32> to vector<48x128xbf16>
    %34 = tpu.concatenate %31, %33 in 1 : vector<48x128xbf16>, vector<48x128xbf16> -> vector<48x256xbf16>
    %c3 = arith.constant 3 : index
    %c0_17 = arith.constant 0 : index
    %c0_18 = arith.constant 0 : index
    %35 = vector.load %arg4[%c3, %c0_17, %c0_18] : memref<9x128x128xbf16, #tpu.memory_space<vmem>>, vector<1x128x128xbf16>
    %36 = vector.shape_cast %35 : vector<1x128x128xbf16> to vector<128x128xbf16>
    %c4 = arith.constant 4 : index
    %c0_19 = arith.constant 0 : index
    %c0_20 = arith.constant 0 : index
    %37 = vector.load %arg4[%c4, %c0_19, %c0_20] : memref<9x128x128xbf16, #tpu.memory_space<vmem>>, vector<1x128x128xbf16>
    %38 = vector.shape_cast %37 : vector<1x128x128xbf16> to vector<128x128xbf16>
    %39 = tpu.concatenate %36, %38 in 0 : vector<128x128xbf16>, vector<128x128xbf16> -> vector<256x128xbf16>
    %cst_21 = arith.constant dense<0.000000e+00> : vector<48x128xf32>
    %40 = tpu.matmul %34, %39, %cst_21 {dimension_numbers = #tpu.dot_dimension_numbers<[1], [0], [0], [1], [0, 0, 1, 1], [], []>} : vector<48x256xbf16>, vector<256x128xbf16>, vector<48x128xf32> -> vector<48x128xf32>
    %c0_22 = arith.constant 0 : index
    %c0_23 = arith.constant 0 : index
    %41 = vector.load %arg7[%c0_22, %c0_23] : memref<48x128xf32, #tpu.memory_space<vmem>>, vector<48x128xf32>
    %42 = arith.addf %41, %40 : vector<48x128xf32>
    %c0_24 = arith.constant 0 : index
    %c0_25 = arith.constant 0 : index
    %43 = vector.load %arg7[%c0_24, %c0_25] : memref<48x128xf32, #tpu.memory_space<vmem>>, vector<48x128xf32>
    tpu.vector_store %arg7[%c0_24, %c0_25], %42 {strides = array<i32>} : memref<48x128xf32, #tpu.memory_space<vmem>>, vector<48x128xf32>,
    %44 = vector.extract_strided_slice %29 {offsets = [2, 0], sizes = [48, 128], strides = [1, 1]} : vector<56x128xf32> to vector<48x128xf32>
    %45 = arith.truncf %44 : vector<48x128xf32> to vector<48x128xbf16>
    %c5 = arith.constant 5 : index
    %c0_26 = arith.constant 0 : index
    %c0_27 = arith.constant 0 : index
    %46 = vector.load %arg4[%c5, %c0_26, %c0_27] : memref<9x128x128xbf16, #tpu.memory_space<vmem>>, vector<1x128x128xbf16>
    %47 = vector.shape_cast %46 : vector<1x128x128xbf16> to vector<128x128xbf16>
    %cst_28 = arith.constant dense<0.000000e+00> : vector<48x128xf32>
    %48 = tpu.matmul %45, %47, %cst_28 {dimension_numbers = #tpu.dot_dimension_numbers<[1], [0], [0], [1], [0, 0, 1, 1], [], []>} : vector<48x128xbf16>, vector<128x128xbf16>, vector<48x128xf32> -> vector<48x128xf32>
    %c0_29 = arith.constant 0 : index
    %c0_30 = arith.constant 0 : index
    %49 = vector.load %arg7[%c0_29, %c0_30] : memref<48x128xf32, #tpu.memory_space<vmem>>, vector<48x128xf32>
    %50 = arith.addf %49, %48 : vector<48x128xf32>
    %c0_31 = arith.constant 0 : index
    %c0_32 = arith.constant 0 : index
    %51 = vector.load %arg7[%c0_31, %c0_32] : memref<48x128xf32, #tpu.memory_space<vmem>>, vector<48x128xf32>
    tpu.vector_store %arg7[%c0_31, %c0_32], %50 {strides = array<i32>} : memref<48x128xf32, #tpu.memory_space<vmem>>, vector<48x128xf32>,
    %c16_i32 = arith.constant 16 : i32
    %52 = arith.addi %1, %c16_i32 : i32
    %c0_33 = arith.constant 0 : index
    %53 = arith.index_cast %52 : i32 to index
    %c0_34 = arith.constant 0 : index
    %54 = vector.load %arg3[%c0_33, %53, %c0_34] : memref<1x72x128xf32, #tpu.memory_space<vmem>>, vector<1x56x128xf32>
    %55 = vector.shape_cast %54 : vector<1x56x128xf32> to vector<56x128xf32>
    %56 = vector.extract_strided_slice %55 {offsets = [0, 0], sizes = [48, 128], strides = [1, 1]} : vector<56x128xf32> to vector<48x128xf32>
    %57 = arith.truncf %56 : vector<48x128xf32> to vector<48x128xbf16>
    %58 = vector.extract_strided_slice %55 {offsets = [1, 0], sizes = [48, 128], strides = [1, 1]} : vector<56x128xf32> to vector<48x128xf32>
    %59 = arith.truncf %58 : vector<48x128xf32> to vector<48x128xbf16>
    %60 = tpu.concatenate %57, %59 in 1 : vector<48x128xbf16>, vector<48x128xbf16> -> vector<48x256xbf16>
    %c6 = arith.constant 6 : index
    %c0_35 = arith.constant 0 : index
    %c0_36 = arith.constant 0 : index
    %61 = vector.load %arg4[%c6, %c0_35, %c0_36] : memref<9x128x128xbf16, #tpu.memory_space<vmem>>, vector<1x128x128xbf16>
    %62 = vector.shape_cast %61 : vector<1x128x128xbf16> to vector<128x128xbf16>
    %c7 = arith.constant 7 : index
    %c0_37 = arith.constant 0 : index
    %c0_38 = arith.constant 0 : index
    %63 = vector.load %arg4[%c7, %c0_37, %c0_38] : memref<9x128x128xbf16, #tpu.memory_space<vmem>>, vector<1x128x128xbf16>
    %64 = vector.shape_cast %63 : vector<1x128x128xbf16> to vector<128x128xbf16>
    %65 = tpu.concatenate %62, %64 in 0 : vector<128x128xbf16>, vector<128x128xbf16> -> vector<256x128xbf16>
    %cst_39 = arith.constant dense<0.000000e+00> : vector<48x128xf32>
    %66 = tpu.matmul %60, %65, %cst_39 {dimension_numbers = #tpu.dot_dimension_numbers<[1], [0], [0], [1], [0, 0, 1, 1], [], []>} : vector<48x256xbf16>, vector<256x128xbf16>, vector<48x128xf32> -> vector<48x128xf32>
    %c0_40 = arith.constant 0 : index
    %c0_41 = arith.constant 0 : index
    %67 = vector.load %arg7[%c0_40, %c0_41] : memref<48x128xf32, #tpu.memory_space<vmem>>, vector<48x128xf32>
    %68 = arith.addf %67, %66 : vector<48x128xf32>
    %c0_42 = arith.constant 0 : index
    %c0_43 = arith.constant 0 : index
    %69 = vector.load %arg7[%c0_42, %c0_43] : memref<48x128xf32, #tpu.memory_space<vmem>>, vector<48x128xf32>
    tpu.vector_store %arg7[%c0_42, %c0_43], %68 {strides = array<i32>} : memref<48x128xf32, #tpu.memory_space<vmem>>, vector<48x128xf32>,
    %70 = vector.extract_strided_slice %55 {offsets = [2, 0], sizes = [48, 128], strides = [1, 1]} : vector<56x128xf32> to vector<48x128xf32>
    %71 = arith.truncf %70 : vector<48x128xf32> to vector<48x128xbf16>
    %c8 = arith.constant 8 : index
    %c0_44 = arith.constant 0 : index
    %c0_45 = arith.constant 0 : index
    %72 = vector.load %arg4[%c8, %c0_44, %c0_45] : memref<9x128x128xbf16, #tpu.memory_space<vmem>>, vector<1x128x128xbf16>
    %73 = vector.shape_cast %72 : vector<1x128x128xbf16> to vector<128x128xbf16>
    %cst_46 = arith.constant dense<0.000000e+00> : vector<48x128xf32>
    %74 = tpu.matmul %71, %73, %cst_46 {dimension_numbers = #tpu.dot_dimension_numbers<[1], [0], [0], [1], [0, 0, 1, 1], [], []>} : vector<48x128xbf16>, vector<128x128xbf16>, vector<48x128xf32> -> vector<48x128xf32>
    %c0_47 = arith.constant 0 : index
    %c0_48 = arith.constant 0 : index
    %75 = vector.load %arg7[%c0_47, %c0_48] : memref<48x128xf32, #tpu.memory_space<vmem>>, vector<48x128xf32>
    %76 = arith.addf %75, %74 : vector<48x128xf32>
    %c0_49 = arith.constant 0 : index
    %c0_50 = arith.constant 0 : index
    %77 = vector.load %arg7[%c0_49, %c0_50] : memref<48x128xf32, #tpu.memory_space<vmem>>, vector<48x128xf32>
    tpu.vector_store %arg7[%c0_49, %c0_50], %76 {strides = array<i32>} : memref<48x128xf32, #tpu.memory_space<vmem>>, vector<48x128xf32>,
    %c0_51 = arith.constant 0 : index
    %c0_52 = arith.constant 0 : index
    %78 = vector.load %arg7[%c0_51, %c0_52] : memref<48x128xf32, #tpu.memory_space<vmem>>, vector<48x128xf32>
    %c0_53 = arith.constant 0 : index
    %c0_54 = arith.constant 0 : index
    %79 = vector.load %arg5[%c0_53, %c0_54] : memref<1x128xf32, #tpu.memory_space<vmem>>, vector<1x128xf32>
    %80 = vector.broadcast %79 : vector<1x128xf32> to vector<48x128xf32>
    %81 = arith.addf %78, %80 : vector<48x128xf32>
    %cst_55 = arith.constant 0.000000e+00 : f32
    %82 = vector.broadcast %cst_55 : f32 to vector<48x128xf32>
    %83 = arith.maximumf %81, %82 : vector<48x128xf32>
    %c0_56 = arith.constant 0 : index
    %c0_57 = arith.constant 0 : index
    %c0_58 = arith.constant 0 : index
    %84 = vector.load %arg6[%c0_56, %c0_57, %c0_58] : memref<1x48x128xf32, #tpu.memory_space<vmem>>, vector<1x48x128xf32>
    %85 = vector.shape_cast %84 : vector<1x48x128xf32> to vector<48x128xf32>
    %86 = vector.shape_cast %83 : vector<48x128xf32> to vector<1x48x128xf32>
    tpu.vector_store %arg6[%c0_56, %c0_57, %c0_58], %86 {strides = array<i32>} : memref<1x48x128xf32, #tpu.memory_space<vmem>>, vector<1x48x128xf32>,
    return
  }
  func.func @transform_0(%arg0: i32, %arg1: i32, %arg2: i32) -> (i32, i32, i32) {
    %c0_i32 = arith.constant 0 : i32
    %c0_i32_0 = arith.constant 0 : i32
    %c0_i32_1 = arith.constant 0 : i32
    return %arg0, %c0_i32, %c0_i32_0 : i32, i32, i32
  }
  func.func @transform_1(%arg0: i32, %arg1: i32, %arg2: i32) -> (i32, i32, i32) {
    %c0_i32 = arith.constant 0 : i32
    %c0_i32_0 = arith.constant 0 : i32
    %c0_i32_1 = arith.constant 0 : i32
    return %c0_i32, %c0_i32_0, %arg1 : i32, i32, i32
  }
  func.func @transform_2(%arg0: i32, %arg1: i32, %arg2: i32) -> (i32, i32) {
    %c0_i32 = arith.constant 0 : i32
    %c0_i32_0 = arith.constant 0 : i32
    return %c0_i32, %arg1 : i32, i32
  }
  func.func @transform_3(%arg0: i32, %arg1: i32, %arg2: i32) -> (i32, i32, i32) {
    %c0_i32 = arith.constant 0 : i32
    return %arg0, %arg2, %arg1 : i32, i32, i32
  }
}

</mosaic_0001>

<bundles_post_ra>
// kernel: tpu_custom_call.1
= control target key start
LH: loop header
LB: loop body
LE: loop exit
PB: predicated region body
PF: predicated region fallthrough
CT: control target
= control target key end

     0   :  { %6 = vsyncpa [#allocation3], 0  ;;  %s145_s0 = inlined_call_operand.hbm [shape: f32[32,128], index: 0, kind: input, shape index: {}]   ;;  %s146_s1 = inlined_call_operand.hbm [shape: f32[32,128], index: 1, kind: output, shape index: {}]  }
   0x1   :  { %7 = vsyncpa [#allocation4], 0  ;;  %s12_s8 = sshll.u32 %s145_s0, 4  ;;  %s119_s9 = smov [#allocation2]   ;;  %s13_s8 = int_to_ptr.hbm [resolvable:$true] %s12_s8 }
   0x2   :  { %s14_s10 = sshll.u32 %s119_s9, 4  ;;  %s120_s11 = smov 128   ;;  %s15_s10 = int_to_ptr.vmem [resolvable:$true] %s14_s10 }
   0x3   :  { %s121_s12 = smov 8  }
   0x4   :  { %20 = dma.hbm_to_vmem [thread:$0]  %s13_s8, 512, %s15_s10, [#allocation3], %s120_s11, %s120_s11, %s121_s12  }
   0x5   :  { %115 = dma.done.wait [#allocation3], 512  }
   0x6   :  { %116 = vsyncadd [#allocation3], 4294966784  ;;  %v33_v0 = vlaneseq  ;;  %v25_v2 = vld [vmem:[#allocation2] sm:$0xff]  ;;  %v28_v3 = vld [vmem:[#allocation2 + $0x18] sm:$0xff]  ;;  %s122_s0 = smov [#allocation5]   ;;  %s50_s16 = sshll.u32 %s146_s1, 4  ;;  %s51_s16 = int_to_ptr.hbm [resolvable:$true] %s50_s16 }
   0x7   :  { %v26_v4 = vld [vmem:[#allocation2 + $0x8] sm:$0xff]  ;;  %v29_v5 = vrot.slane %v25_v2, 7  ;;  %v32_v6 = vrot.slane %v28_v3, 7  ;;  %v27_v8 = vld [vmem:[#allocation2 + $0x10] sm:$0xff]  ;;  %s48_s13 = sshll.u32 %s122_s0, 4  ;;  %s49_s13 = int_to_ptr.vmem [resolvable:$true] %s48_s13 }
   0x8   :  { %v34_v1 = vshrl.u32 %v33_v0, 7  ;;  %v30_v7 = vrot.slane %v26_v4, 7  ;;  %v31_v9 = vrot.slane %v27_v8, 7 }
   0xa   :  { %vm35_vm0 = vcmp.lt.s32.totalorder %v34_v1, 1 }
   0xb   :  { %v39_v10 = vsel %vm35_vm0, %v32_v6, %v29_v5  ;;  %v38_v11 = vsel %vm35_vm0, %v29_v5, %v30_v7  ;;  %v37_v12 = vsel %vm35_vm0, %v30_v7, %v31_v9  ;;  %v36_v13 = vsel %vm35_vm0, %v31_v9, %v32_v6 }
   0xc   :  { %40 = vst [vmem:[#allocation5] sm:$0xff] %v39_v10 }
   0xd   :  { %41 = vst [vmem:[#allocation5 + $0x8] sm:$0xff] %v38_v11 }
   0xe   :  { %42 = vst [vmem:[#allocation5 + $0x10] sm:$0xff] %v37_v12 }
   0xf   :  { %43 = vst [vmem:[#allocation5 + $0x18] sm:$0xff] %v36_v13 }
  0x10   :  { %56 = dma.vmem_to_hbm [thread:$0]  %s49_s13, 512, %s51_s16, [#allocation4], %s120_s11, %s120_s11, %s121_s12  }
  0x11   :  { %117 = dma.done.wait [#allocation4], 512  }
  0x12   :  { %118 = vsyncadd [#allocation4], 4294966784 }
  0x13   :  { %61 = vsyncpa [#allocation3], 1 }
  0x14   :  { %62 = vsyncpa [#allocation4], 1 }

// kernel: tpu_custom_call.1
= control target key start
LH: loop header
LB: loop body
LE: loop exit
PB: predicated region body
PF: predicated region fallthrough
CT: control target
= control target key end

     0   :  { %8 = vsyncpa [#allocation4], 0  ;;  %s2551_s0 = inlined_call_operand.hbm [shape: f32[2,72,128], index: 0, kind: input, shape index: {}]   ;;  %s2552_s1 = inlined_call_operand.hbm [shape: bf16[9,128,128], index: 1, kind: input, shape index: {}]   ;;  %s2553_s2 = inlined_call_operand.vmem [shape: f32[1,128], index: 2, kind: input, shape index: {}]   ;;  %s2554_s3 = inlined_call_operand.hbm [shape: f32[2,48,128], index: 3, kind: output, shape index: {}]  }
   0x1   :  { %10 = vsyncpa [#allocation4 + $0x1], 0 }
   0x2   :  { %11 = vsyncpa [#allocation7], 0 }
   0x3   :  { %12 = vsyncpa [#allocation5], 0 }
   0x4   :  { %14 = vsyncpa [#allocation5 + $0x1], 0  ;;  %s2232_s12 = smov 0   ;;  %s2234_s13 = smov 0  }
   0x5   :  { %s2236_s14 = smov 0   ;;  %s2238_s15 = smov 0  }
   0x6   :  { %s2240_s16 = smov 0   ;;  %s2242_s17 = smov 0  }
   0x7 LB: > { %s1570_s18 = sadd.s32 4294967295, %s2203_s17   ;;  %s1571_s19 = sadd.s32 4294967294, %s2203_s17   ;;  %s2203_s17 = sphi %s2242_s17, %s20_s17   ;;  %s2199_s16 = sphi %s2240_s16, %s2565_s16   ;;  %s2195_s15 = sphi %s2238_s15, %s2564_s15   ;;  %s2191_s14 = sphi %s2236_s14, %s2563_s14   ;;  %s2187_s13 = sphi %s2234_s13, %s2562_s13   ;;  %s2183_s12 = sphi %s2232_s12, %s2561_s12  }
   0x8   : > { %p59_p0 = scmp.ne.s32.totalorder %s2187_s13, %s2183_s12  ;;  %p2266_p1 = scmp.eq.s32.totalorder %s1570_s18, 0 }
   0x9   : > { %p2270_p2 = scmp.eq.s32.totalorder %s1570_s18, 1  ;;  %p145_p3 = scmp.eq.s32.totalorder %s1571_s19, 1 }
   0xa   : > { %p2276_p4 = por %p2266_p1, %p59_p0  ;;  %p1572_p5 = scmp.ge.s32.totalorder %s2203_s17, 1 }
   0xb   : > { %p2281_p6 = por %p145_p3, %p59_p0  ;;  %p152_p7 = scmp.lt.s32.totalorder %s2203_s17, 3 }
   0xc   : > { %s165_s26 = sshll.u32 %s2552_s1, 4  ;;  %s2205_s28 = smov [#allocation6]   ;;  %s166_s26 = int_to_ptr.hbm [resolvable:$true] %s165_s26 }
   0xd   : > { %p2289_p8 = pnand %p1572_p5, %p152_p7  ;;  %s167_s29 = sshll.u32 %s2205_s28, 4  ;;  %s168_s29 = int_to_ptr.vmem [resolvable:$true] %s167_s29 }
   0xe   : > { %p1575_p11 = scmp.ge.s32.totalorder %s2203_s17, 2  ;;  %s2206_s30 = smov 64  }
   0xf   : > { %p1985_p9 = pneg %p2289_p8  ;;  %s2207_s4 = smov 4  }
  0x10   : > { %s39_s5 = sadd.s32 1, %s2199_s16  ;;  %s46_s6 = sadd.s32 1, %s2191_s14 }
  0x11   : > { %p1986_p10 = pnand %p1985_p9, %p2266_p1  ;;  %p41_p12 = scmp.ge.s32.totalorder %s39_s5, 2 }
  0x12   : > { %p53_p13 = scmp.ne.s32.totalorder %s2191_s14, %s2187_s13  ;;  %p54_p0 = scmp.eq.s32.totalorder %s2203_s17, 0 }
  0x13   : > { %1988 = dma.hbm_to_vmem [thread:$0]  (!%p1986_p10), %s166_s26, 9216, %s168_s29, [#allocation7], %s2206_s30, %s2206_s30, %s2207_s4  }
  0x14   : > { %s2567_s5 = smov (%p41_p12, %s39_s5), 0  ;;  %p55_p3 = por %p54_p0, %p53_p13 }
  0x15   : > { %p2307_p5 = por %p2270_p2, %p53_p13  ;;  %s43_s8 = ssub.s32 %s2199_s16, %s2567_s5 }
  0x16   : > { %p1998_p7 = scmp.lt.s32.totalorder %s2203_s17, 2  ;;  %p44_p9 = scmp.eq.s32.totalorder %s43_s8, 0 }
  0x17   : > { %s187_s9 = sand.u32 1, %s2191_s14   ;;  %s1973_s18 = smul.u32 72, %s2199_s16 }
  0x18   : > { %s1972_s10 = smul.u32 72, %s187_s9  ;;  %p1990_p10 = pnand %p1998_p7, %p55_p3 }
  0x19   : > { %s2316_s11 = scalar_select %p44_p9, %s2191_s14, %s46_s6  }
  0x1a   : > { %s191_s19 = scalar_lea.vmem [#allocation3], %s1972_s10  ;;  %s196_s28 = scalar_lea.hbm %s2551_s0, %s1973_s18 }
  0x1b   : > { %s199_s24 = sshll.u32 %s191_s19, 4  ;;  %s197_s21 = sshll.u32 %s196_s28, 4  ;;  %s200_s24 = int_to_ptr.vmem [resolvable:$true] %s199_s24  ;;  %s198_s21 = int_to_ptr.hbm [resolvable:$true] %s197_s21 }
  0x1c   : > { %s188_s29 = scalar_lea.sflag [#allocation4], %s187_s9  ;;  %s2208_s30 = smov 128  }
  0x1d   : > { %s2209_s4 = smov 8   ;;  %211 = sbr.rel (%p2289_p8) target bundleno = 330 (0x14a), region = 32 }
  0x1e   : > { %1992 = dma.hbm_to_vmem [thread:$0]  (!%p1990_p10), %s198_s21, 1152, %s200_s24, %s188_s29, %s2208_s30, %s2208_s30, %s2209_s4  }
  0x1f   : > { %s2325_s6 = sand.u32 (!%p2289_p8), 1, %s2187_s13  }
  0x20   : > { %s1974_s8 = smul.u32 (!%p2289_p8), 72, %s2325_s6  ;;  %s214_s10 = scalar_lea.sflag (!%p2289_p8), [#allocation4], %s2325_s6 }
  0x22   : > { %s2329_s19 = scalar_lea.vmem [#allocation3], %s1974_s8 }
  0x23   : > { %2170 = dma.done.wait (%p2276_p4), %s214_s10, 1152  }
  0x24   : > { %2172 = vsyncadd (%p2276_p4), %s214_s10, 4294966144 }
  0x25   : > { %2174 = dma.done.wait (%p2266_p1), [#allocation7], 9216  }
  0x26   : > { %2176 = vsyncadd (%p2266_p1), [#allocation7], 4294958080  ;;  %v1891_v0 = vld [vmem:[#allocation6 + $0x38] sm:$0xff]  ;;  %v1890_v3 = vld [vmem:[#allocation6 + $0x30] sm:$0xff]  ;;  %vm528_vm0 = vcmask 1046528   ;;  %s1975_s27 = smul.u32 48, %s2325_s6 }
  0x27   : > { %v1907_v1 = vld [vmem:[#allocation6 + $0xb8] sm:$0xff]  ;;  %451 = vmatpush.bf16.msra.mxu0 %v1891_v0  ;;  %1956 = vmatpush.bf16.msra.mxu1 %v1891_v0  ;;  %v1906_v4 = vld [vmem:[#allocation6 + $0xb0] sm:$0xff]  ;;  %v1889_v6 = vld [vmem:[#allocation6 + $0x28] sm:$0xff]  ;;  %vm290_vm1 = vsmask.f32 7424  ;;  %s1976_s18 = smul.u32 48, %s2195_s15 }
  0x28   : > { %v1915_v2 = vld [vmem:[#allocation6 + $0xf8] sm:$0xff]  ;;  %587 = vmatpush.bf16.msra.mxu2 %v1907_v1  ;;  %v1914_v5 = vld [vmem:[#allocation6 + $0xf0] sm:$0xff]  ;;  %v1905_v7 = vld [vmem:[#allocation6 + $0xa8] sm:$0xff]  ;;  %s2491_s9 = scalar_lea.vmem [#allocation8], %s1975_s27  ;;  %s1432_s21 = scalar_lea.sflag [#allocation5], %s2325_s6 }
  0x29   : > { %827 = vmatpush.bf16.msra.mxu3 %v1915_v2  ;;  %v1913_v8 = vld [vmem:[#allocation6 + $0xe8] sm:$0xff]  ;;  %v1888_v9 = vld [vmem:[#allocation6 + $0x20] sm:$0xff]  ;;  %v1887_v12 = vld [vmem:[#allocation6 + $0x18] sm:$0xff]  ;;  %s1446_s26 = scalar_lea.hbm %s2554_s3, %s1976_s18  ;;  %s1447_s28 = sshll.u32 %s2491_s9, 4  ;;  %s1448_s28 = int_to_ptr.vmem [resolvable:$true] %s1447_s28 }
  0x2a   : > { %v1904_v10 = vld [vmem:[#allocation6 + $0xa0] sm:$0xff]  ;;  %v1903_v13 = vld [vmem:[#allocation6 + $0x98] sm:$0xff]  ;;  %v1886_v15 = vld [vmem:[#allocation6 + $0x10] sm:$0xff]  ;;  %s1449_s15 = sshll.u32 %s1446_s26, 4  ;;  %s2137_s10 = scalar_lea.hbm %s2554_s3, 96  ;;  %s1450_s15 = int_to_ptr.hbm [resolvable:$true] %s1449_s15 }
  0x2b   : > { %452 = vmatpush.bf16.msra.mxu0 %v1890_v3  ;;  %1957 = vmatpush.bf16.msra.mxu1 %v1890_v3  ;;  %v1912_v11 = vld [vmem:[#allocation6 + $0xe0] sm:$0xff]  ;;  %v1911_v14 = vld [vmem:[#allocation6 + $0xd8] sm:$0xff]  ;;  %v1902_v20 = vld [vmem:[#allocation6 + $0x90] sm:$0xff]  ;;  %s2131_s29 = sshra.s32 %s1450_s15, 4  ;;  %s2132_s29 = int_to_ptr.hbm [resolvable:$true] %s2131_s29 }
  0x2c   : > { %588 = vmatpush.bf16.msra.mxu2 %v1906_v4  ;;  %v255_v16 = vld [vmem:[%s2329_s19] sm:$0xff]  ;;  %v2341_v17 = vld [vmem:[%s2329_s19 + $0x8] sm:$0xff]  ;;  %v2350_v22 = vld [vmem:[%s2329_s19 + $0x10] sm:$0xff]  ;;  %s2133_s30 = scalar_lea.hbm %s2132_s29, 48  ;;  %p2138_p8 = scmp.lt.s32.totalorder %s2132_s29, %s2554_s3 }
  0x2d   : > { %828 = vmatpush.bf16.msra.mxu3 %v1914_v5  ;;  %v2344_v18 = vld [vmem:[%s2329_s19 + $0x20] sm:$0xff]  ;;  %v2347_v19 = vld [vmem:[%s2329_s19 + $0x28] sm:$0xff]  ;;  %v2353_v23 = vld [vmem:[%s2329_s19 + $0x18] sm:$0xff]  ;;  %v262_v24 = vpack.c.bf16 %v255_v16, %v255_v16  ;;  %v263_v25 = vpack.c.bf16 %v2341_v17, %v2341_v17  ;;  %v505_v31 = vpack.c.bf16 %v2341_v17, %v255_v16  ;;  %v639_v33 = vpack.c.bf16 %v2350_v22, %v2350_v22  ;;  %p2134_p1 = scmp.ne.s32.totalorder %s2132_s29, %s2133_s30  ;;  %p2139_p12 = scmp.lt.s32.totalorder %s2137_s10, %s2133_s30 }
  0x2e   : > { %v1910_v21 = vld [vmem:[#allocation6 + $0xd0] sm:$0xff]  ;;  %v266_v26 = vpack.c.bf16 %v2344_v18, %v2344_v18  ;;  %v267_v27 = vpack.c.bf16 %v2347_v19, %v2347_v19  ;;  %v1885_v28 = vld [vmem:[#allocation6 + $0x8] sm:$0xff]  ;;  %v506_v32 = vpack.c.bf16 %v2353_v23, %v2350_v22  ;;  %v1884_v38 = vld [vmem:[#allocation6] sm:$0xff]  ;;  %v265_v58 = vpack.c.bf16 %v2353_v23, %v2353_v23 }
  0x2f   : > { %453 = vmatpush.bf16.msra.mxu0 %v1889_v6  ;;  %1958 = vmatpush.bf16.msra.mxu1 %v1889_v6  ;;  %v1901_v29 = vld [vmem:[#allocation6 + $0x88] sm:$0xff]  ;;  %v275_v34 = vunpack.c.l.b16 %v262_v24  ;;  %v276_v35 = vunpack.c.l.b16 %v263_v25  ;;  %v1899_v39 = vld [vmem:[#allocation6 + $0x78] sm:$0xff]  ;;  %v1900_v40 = vld [vmem:[#allocation6 + $0x80] sm:$0xff]  ;;  %v529_v41 = vrot.slane %v505_v31, 1  ;;  %v652_v43 = vunpack.c.l.b16 %v639_v33  ;;  %p2135_p2 = pnand %p2134_p1, %p2307_p5  ;;  %p2140_p13 = por %p2139_p12, %p2138_p8 }
  0x30   : > { %589 = vmatpush.bf16.msra.mxu2 %v1905_v7  ;;  %v1909_v30 = vld [vmem:[#allocation6 + $0xc8] sm:$0xff]  ;;  %v2366_v36 = vunpack.c.l.b16 %v266_v26  ;;  %v2368_v37 = vunpack.c.l.b16 %v267_v27  ;;  %v530_v42 = vrot.slane %v506_v32, 1  ;;  %v1908_v44 = vld [vmem:[#allocation6 + $0xc0] sm:$0xff]  ;;  %v1923_v45 = vld [vmem:[#allocation6 + $0x138] sm:$0xff]  ;;  %v507_v61 = vpack.c.bf16 %v2347_v19, %v2344_v18 }
  0x31   : > { %829 = vmatpush.bf16.msra.mxu3 %v1913_v8  ;;  %v2370_v46 = vpack.c.b16 %v276_v35, %v275_v34  ;;  %v1947_v48 = vld [vmem:[#allocation6 + $0x1f8] sm:$0xff]  ;;  %v1898_v49 = vld [vmem:[#allocation6 + $0x70] sm:$0xff]  ;;  %v2377_v51 = vpack.c.b16 %v652_v43, %v276_v35  ;;  %v1897_v55 = vld [vmem:[#allocation6 + $0x68] sm:$0xff]  ;;  %v278_v0 = vunpack.c.l.b16 %v265_v58  ;;  %v893_v58 = vpack.c.bf16 %v2350_v22, %v2341_v17  ;;  %p2136_p4 = pneg %p2135_p2 }
  0x32   : > { %v2374_v47 = vpack.c.b16 %v2368_v37, %v2366_v36  ;;  %v531_v50 = vsel %vm528_vm0, %v529_v41, %v530_v42  ;;  %v1922_v52 = vld [vmem:[#allocation6 + $0x130] sm:$0xff]  ;;  %v1939_v53 = vld [vmem:[#allocation6 + $0x1b8] sm:$0xff]  ;;  %v1921_v56 = vld [vmem:[#allocation6 + $0x128] sm:$0xff]  ;;  %v2386_v3 = vrot.slane %v507_v61, 1 }
  0x33   : > { %454 = vmatpush.bf16.msra.mxu0 %v1888_v9  ;;  %1959 = vmatpush.bf16.msra.mxu1 %v1888_v9  ;;  %v1946_v54 = vld [vmem:[#allocation6 + $0x1f0] sm:$0xff]  ;;  %v1945_v59 = vld [vmem:[#allocation6 + $0x1e8] sm:$0xff]  ;;  %v1896_v60 = vld [vmem:[#allocation6 + $0x60] sm:$0xff]  ;;  %v2388_v6 = vpack.c.b16 %v278_v0, %v652_v43  ;;  %v294_v8 = vshll.u32 %v2370_v46, 16  ;;  %p2141_p0 = pnand %p2140_p13, %p2136_p4 }
  0x34   : > { %590 = vmatpush.bf16.msra.mxu2 %v1904_v10  ;;  %v1938_v57 = vld [vmem:[#allocation6 + $0x1b0] sm:$0xff]  ;;  %v1920_v62 = vld [vmem:[#allocation6 + $0x120] sm:$0xff]  ;;  %v1937_v63 = vld [vmem:[#allocation6 + $0x1a8] sm:$0xff]  ;;  %v2393_v10 = vsel %vm528_vm0, %v530_v42, %v2386_v3 }
  0x35   : > { %830 = vmatpush.bf16.msra.mxu3 %v1912_v11  ;;  %v1944_v1 = vld [vmem:[#allocation6 + $0x1e0] sm:$0xff]  ;;  %v1895_v2 = vld [vmem:[#allocation6 + $0x58] sm:$0xff]  ;;  %v1894_v9 = vld [vmem:[#allocation6 + $0x50] sm:$0xff]  ;;  %v2396_v11 = vpack.c.b16 %v2366_v36, %v278_v0  ;;  %v299_v24 = vshll.u32 %v2388_v6, 16 }
  0x36   : > { %v1919_v4 = vld [vmem:[#allocation6 + $0x118] sm:$0xff]  ;;  %v1936_v5 = vld [vmem:[#allocation6 + $0x1a0] sm:$0xff]  ;;  %v1893_v16 = vld [vmem:[#allocation6 + $0x48] sm:$0xff] }
  0x37   : > { %455 = vmatpush.bf16.msra.mxu0 %v1887_v12  ;;  %1960 = vmatpush.bf16.msra.mxu1 %v1887_v12  ;;  %v1943_v7 = vld [vmem:[#allocation6 + $0x1d8] sm:$0xff]  ;;  %v1918_v12 = vld [vmem:[#allocation6 + $0x110] sm:$0xff]  ;;  %v1917_v25 = vld [vmem:[#allocation6 + $0x108] sm:$0xff]  ;;  %v301_v34 = vrot.slane %v299_v24, 1 }
  0x38   : > { %591 = vmatpush.bf16.msra.mxu2 %v1903_v13  ;;  %v1935_v13 = vld [vmem:[#allocation6 + $0x198] sm:$0xff]  ;;  %v2405_v26 = vld [vmem:[%s2329_s19 + $0x30] sm:$0xff]  ;;  %v1934_v27 = vld [vmem:[#allocation6 + $0x190] sm:$0xff] }
  0x39   : > { %831 = vmatpush.bf16.msra.mxu3 %v1911_v14  ;;  %v669_v14 = vshll.u32 %v2377_v51, 16  ;;  %v1941_v31 = vld [vmem:[#allocation6 + $0x1c8] sm:$0xff]  ;;  %v1892_v32 = vld [vmem:[#allocation6 + $0x40] sm:$0xff]  ;;  %v268_v35 = vpack.c.bf16 %v2405_v26, %v2405_v26 }
  0x3a   : > { %v1916_v36 = vld [vmem:[#allocation6 + $0x100] sm:$0xff] }
  0x3b   : > { %456 = vmatpush.bf16.msra.mxu0 %v1886_v15  ;;  %1961 = vmatpush.bf16.msra.mxu1 %v1886_v15  ;;  %v1942_v15 = vld [vmem:[#allocation6 + $0x1d0] sm:$0xff]  ;;  %v1940_v43 = vld [vmem:[#allocation6 + $0x1c0] sm:$0xff] }
  0x3c   : > { %592 = vmatpush.bf16.msra.mxu2 %v1902_v20  ;;  %v292_v20 = vshrl.u32 %v2370_v46, 16  ;;  %v1952_v0 = vld [vmem:[#allocation6 + $0x220] sm:$0xff] }
  0x3d   : > { %832 = vmatpush.bf16.msra.mxu3 %v1910_v21  ;;  %v296_v21 = vrot.slane %v294_v8, 1 }
  0x3f   : > { %457 = vmatpush.bf16.msra.mxu0 %v1885_v28  ;;  %1962 = vmatpush.bf16.msra.mxu1 %v1885_v28  ;;  %v667_v28 = vshrl.u32 %v2377_v51, 16  ;;  %v297_v33 = vor.u32 %v296_v21, %v292_v20  ;;  %v1949_v20 = vld [vmem:[#allocation6 + $0x208] sm:$0xff]  ;;  %v311_v21 = vshrl.u32 %v2374_v47, 16 }
  0x40   : > { %593 = vmatpush.bf16.msra.mxu2 %v1901_v29  ;;  %v671_v29 = vrot.slane %v669_v14, 1 }
  0x41   : > { %833 = vmatpush.bf16.msra.mxu3 %v1909_v30  ;;  %v674_v30 = vshll.u32 %v2396_v11, 16 }
  0x42   : > { %v672_v41 = vor.u32 %v671_v29, %v667_v28 }
  0x43   : > { %458 = vmatpush.bf16.msra.mxu0 %v1884_v38  ;;  %1963 = vmatpush.bf16.msra.mxu1 %v1884_v38  ;;  %v1931_v38 = vld [vmem:[#allocation6 + $0x178] sm:$0xff]  ;;  %v676_v42 = vrot.slane %v674_v30, 1  ;;  %v1948_v30 = vld [vmem:[#allocation6 + $0x200] sm:$0xff] }
  0x44   : > { %594 = vmatpush.bf16.msra.mxu2 %v1900_v40  ;;  %v1955_v40 = vld [vmem:[#allocation6 + $0x238] sm:$0xff] }
  0x45   : > { %834 = vmatpush.bf16.msra.mxu3 %v1908_v44  ;;  %v302_v44 = vsel %vm290_vm1, %v297_v33, %v301_v34  ;;  %v1784_v33 = vld [vmem:[%s2329_s19 + $0x40] sm:$0xff] }
  0x46   : > { %459 = vmatmul.bf16.vlgmr.msra.gmra.mxu0 %v2370_v46  ;;  %469 = vmatmul.bf16.vlgmr.msra.gmra.mxu1 %v2374_v47  ;;  %v2412_v46 = vunpack.c.l.b16 %v268_v35 }
  0x47   : > { %475 = vmatpush.bf16.msrb.mxu1 %v1899_v39  ;;  %851 = vmatpush.bf16.msrb.mxu0 %v1923_v45  ;;  %v1933_v39 = vld [vmem:[#allocation6 + $0x188] sm:$0xff]  ;;  %v534_v45 = vrot.slane %v268_v35, 1 }
  0x48   : > { %595 = vmatmul.bf16.vlgmr.msra.gmra.mxu2 %v531_v50  ;;  %835 = vmatmul.bf16.vlgmr.msra.gmra.mxu3 %v2377_v51  ;;  %v677_v50 = vsel %vm290_vm1, %v672_v41, %v676_v42  ;;  %v1954_v51 = vld [vmem:[#allocation6 + $0x230] sm:$0xff]  ;;  %v289_v14 = vpack.c.b16 %v2412_v46, %v2412_v46 }
  0x49   : > { %1238 = vmatpush.bf16.msrb.mxu3 %v1947_v48  ;;  %1214 = vmatpush.bf16.msrb.mxu2 %v1939_v53  ;;  %v1930_v48 = vld [vmem:[#allocation6 + $0x170] sm:$0xff]  ;;  %v2419_v53 = vpack.c.b16 %v2412_v46, %v2368_v37  ;;  %v894_v37 = vpack.c.bf16 %v2344_v18, %v2353_v23  ;;  %v1927_v18 = vld [vmem:[#allocation6 + $0x158] sm:$0xff] }
  0x4a   : > { %v315_v24 = vshll.u32 %v289_v14, 16 }
  0x4b   : > { %476 = vmatpush.bf16.msrb.mxu1 %v1898_v49  ;;  %852 = vmatpush.bf16.msrb.mxu0 %v1922_v52  ;;  %v1932_v49 = vld [vmem:[#allocation6 + $0x180] sm:$0xff]  ;;  %v535_v52 = vsel %vm528_vm0, %v2386_v3, %v534_v45  ;;  %v2428_v61 = vrot.slane %v894_v37, 1  ;;  %v686_v28 = vshrl.u32 %v2419_v53, 16 }
  0x4d   : > { %1239 = vmatpush.bf16.msrb.mxu3 %v1946_v54  ;;  %1215 = vmatpush.bf16.msrb.mxu2 %v1938_v57  ;;  %v1929_v54 = vld [vmem:[#allocation6 + $0x168] sm:$0xff]  ;;  %v307_v57 = vshll.u32 %v2374_v47, 16 }
  0x4f   : > { %477 = vmatpush.bf16.msrb.mxu1 %v1897_v55  ;;  %853 = vmatpush.bf16.msrb.mxu0 %v1921_v56  ;;  %v1953_v55 = vld [vmem:[#allocation6 + $0x228] sm:$0xff]  ;;  %v303_v56 = vshrl.u32 %v2388_v6, 16 }
  0x51   : > { %1240 = vmatpush.bf16.msrb.mxu3 %v1945_v59  ;;  %1216 = vmatpush.bf16.msrb.mxu2 %v1937_v63  ;;  %v1928_v59 = vld [vmem:[#allocation6 + $0x160] sm:$0xff]  ;;  %v682_v63 = vshll.u32 %v2419_v53, 16 }
  0x53   : > { %478 = vmatpush.bf16.msrb.mxu1 %v1896_v60  ;;  %854 = vmatpush.bf16.msrb.mxu0 %v1920_v62  ;;  %v916_v60 = vrot.slane %v893_v58, 1  ;;  %v678_v62 = vshrl.u32 %v2396_v11, 16  ;;  %v684_v23 = vrot.slane %v682_v63, 1 }
  0x55   : > { %1241 = vmatpush.bf16.msrb.mxu3 %v1944_v1  ;;  %1217 = vmatpush.bf16.msrb.mxu2 %v1936_v5  ;;  %v305_v1 = vor.u32 %v303_v56, %v301_v34  ;;  %v918_v17 = vsel %vm528_vm0, %v916_v60, %v2428_v61  ;;  %v680_v22 = vor.u32 %v678_v62, %v676_v42 }
  0x56   : > { %464 = vmatmul.bf16.gmra.mxu0 %v2388_v6  ;;  %v688_v34 = vor.u32 %v686_v28, %v684_v23 }
  0x57   : > { %479 = vmatpush.bf16.msrb.mxu1 %v1895_v2  ;;  %855 = vmatpush.bf16.msrb.mxu0 %v1919_v4  ;;  %v309_v2 = vrot.slane %v307_v57, 1  ;;  %v2433_v4 = vld [vmem:[%s2329_s19 + $0x38] sm:$0xff] }
  0x58   : > { %600 = vmatmul.bf16.gmra.mxu2 %v2393_v10  ;;  %840 = vmatmul.bf16.gmra.mxu3 %v2396_v11  ;;  %v2439_v5 = vpack.c.bf16 %v2433_v4, %v2433_v4  ;;  %v685_v11 = vsel %vm290_vm1, %v680_v22, %v684_v23 }
  0x59   : > { %1242 = vmatpush.bf16.msrb.mxu3 %v1943_v7  ;;  %1218 = vmatpush.bf16.msrb.mxu2 %v1935_v13  ;;  %v1951_v7 = vld [vmem:[#allocation6 + $0x218] sm:$0xff]  ;;  %v310_v8 = vsel %vm290_vm1, %v305_v1, %v309_v2  ;;  %v1950_v13 = vld [vmem:[#allocation6 + $0x210] sm:$0xff] }
  0x5a   : > { %v921_v56 = vrot.slane %v2439_v5, 1 }
  0x5b   : > { %480 = vmatpush.bf16.msrb.mxu1 %v1894_v9  ;;  %856 = vmatpush.bf16.msrb.mxu0 %v1918_v12  ;;  %v1926_v9 = vld [vmem:[#allocation6 + $0x150] sm:$0xff]  ;;  %v664_v12 = vunpack.c.l.b16 %v2439_v5 }
  0x5d   : > { %1243 = vmatpush.bf16.msrb.mxu3 %v1942_v15  ;;  %1219 = vmatpush.bf16.msrb.mxu2 %v1934_v27  ;;  %v1925_v15 = vld [vmem:[#allocation6 + $0x148] sm:$0xff]  ;;  %v1924_v27 = vld [vmem:[#allocation6 + $0x140] sm:$0xff] }
  0x5f   : > { %481 = vmatpush.bf16.msrb.mxu1 %v1893_v16  ;;  %857 = vmatpush.bf16.msrb.mxu0 %v1917_v25  ;;  %v665_v16 = vpack.c.b16 %v664_v12, %v664_v12  ;;  %v1046_v25 = vpack.c.b16 %v664_v12, %v2412_v46 }
  0x61   : > { %1244 = vmatpush.bf16.msrb.mxu3 %v1941_v31  ;;  %1220 = vmatpush.bf16.msrb.mxu2 %v1933_v39  ;;  %v690_v29 = vshll.u32 %v665_v16, 16  ;;  %v313_v31 = vor.u32 %v311_v21, %v309_v2  ;;  %v1031_v39 = vpack.c.bf16 %v1784_v33, %v1784_v33 }
  0x63   : > { %482 = vmatpush.bf16.msrb.mxu1 %v1892_v32  ;;  %858 = vmatpush.bf16.msrb.mxu0 %v1916_v36  ;;  %v1069_v32 = vshll.u32 %v1046_v25, 16  ;;  %v692_v35 = vrot.slane %v690_v29, 1  ;;  %v1051_v42 = vunpack.c.l.b16 %v1031_v39 }
  0x65   : > { %1245 = vmatpush.bf16.msrb.mxu3 %v1940_v43  ;;  %1221 = vmatpush.bf16.msrb.mxu2 %v1932_v49  ;;  %v1052_v43 = vpack.c.b16 %v1051_v42, %v1051_v42  ;;  %v2487_v42 = vld [vmem:[%s2553_s2] ss:$0 sm:$0xff] }
  0x66   : > { %483 = vmatmul.bf16.vlgmr.msrb.gmra.mxu1 %v302_v44  ;;  %859 = vmatmul.bf16.vlgmr.msrb.gmra.mxu0 %v677_v50  ;;  %v1073_v44 = vshrl.u32 %v1046_v25, 16  ;;  %v895_v50 = vpack.c.bf16 %v2405_v26, %v2347_v19 }
  0x67   : > { %974 = vmatpush.bf16.msra.mxu1 %v1931_v38  ;;  %1361 = vmatpush.bf16.msra.mxu0 %v1955_v40  ;;  %v1071_v38 = vrot.slane %v1069_v32, 1  ;;  %v1077_v45 = vshll.u32 %v1052_v43, 16 }
  0x68   : > { %605 = vmatmul.bf16.gmra.mxu2 %v535_v52  ;;  %845 = vmatmul.bf16.gmra.mxu3 %v2419_v53 }
  0x69   : > { %1964 = vmatpush.bf16.msra.mxu2 %v1955_v40  ;;  %v693_v40 = vsel %vm290_vm1, %v688_v34, %v692_v35  ;;  %v1072_v41 = vsel %vm290_vm1, %v313_v31, %v1071_v38  ;;  %v1075_v46 = vor.u32 %v1073_v44, %v1071_v38 }
  0x6b   : > { %975 = vmatpush.bf16.msra.mxu1 %v1930_v48  ;;  %1362 = vmatpush.bf16.msra.mxu0 %v1954_v51  ;;  %v1079_v48 = vrot.slane %v1077_v45, 1 }
  0x6d   : > { %1965 = vmatpush.bf16.msra.mxu2 %v1954_v51  ;;  %v1080_v49 = vsel %vm290_vm1, %v1075_v46, %v1079_v48  ;;  %v1282_v51 = vpack.c.bf16 %v2433_v4, %v2405_v26 }
  0x6f   : > { %976 = vmatpush.bf16.msra.mxu1 %v1929_v54  ;;  %1363 = vmatpush.bf16.msra.mxu0 %v1953_v55  ;;  %v1306_v52 = vrot.slane %v1282_v51, 1  ;;  %v1308_v54 = vrot.slane %v1031_v39, 1 }
  0x71   : > { %1966 = vmatpush.bf16.msra.mxu2 %v1953_v55  ;;  %v1307_v55 = vsel %vm528_vm0, %v2386_v3, %v1306_v52 }
  0x73   : > { %977 = vmatpush.bf16.msra.mxu1 %v1928_v59  ;;  %1364 = vmatpush.bf16.msra.mxu0 %v1952_v0 }
  0x75   : > { %1967 = vmatpush.bf16.msra.mxu2 %v1952_v0 }
  0x76   : > { %488 = vmatmul.bf16.gmra.mxu1 %v310_v8  ;;  %864 = vmatmul.bf16.gmra.mxu0 %v685_v11 }
  0x77   : > { %978 = vmatpush.bf16.msra.mxu1 %v1927_v18  ;;  %1365 = vmatpush.bf16.msra.mxu0 %v1951_v7 }
  0x78   : > { %1222 = vmatmul.bf16.vlgmr.msrb.gmra.mxu2 %v2388_v6  ;;  %1246 = vmatmul.bf16.vlgmr.msrb.gmra.mxu3 %v310_v8  ;;  %v317_v6 = vrot.slane %v315_v24, 1 }
  0x79   : > { %1968 = vmatpush.bf16.msra.mxu2 %v1951_v7 }
  0x7a   : > { %v318_v36 = vsel %vm290_vm1, %v313_v31, %v317_v6 }
  0x7b   : > { %979 = vmatpush.bf16.msra.mxu1 %v1926_v9  ;;  %1366 = vmatpush.bf16.msra.mxu0 %v1950_v13 }
  0x7d   : > { %1969 = vmatpush.bf16.msra.mxu2 %v1950_v13 }
  0x7f   : > { %980 = vmatpush.bf16.msra.mxu1 %v1925_v15  ;;  %1367 = vmatpush.bf16.msra.mxu0 %v1949_v20 }
  0x81   : > { %1970 = vmatpush.bf16.msra.mxu2 %v1949_v20 }
  0x83   : > { %981 = vmatpush.bf16.msra.mxu1 %v1924_v27  ;;  %1368 = vmatpush.bf16.msra.mxu0 %v1948_v30 }
  0x85   : > { %1971 = vmatpush.bf16.msra.mxu2 %v1948_v30 }
  0x86   : > { %493 = vmatmul.bf16.gmra.mxu1 %v318_v36  ;;  %869 = vmatmul.bf16.gmra.mxu0 %v693_v40 }
  0x88   : > { %1227 = vmatmul.bf16.gmra.mxu2 %v2374_v47  ;;  %1251 = vmatmul.bf16.gmra.mxu3 %v1072_v41  ;;  %v919_v47 = vrot.slane %v895_v50, 1 }
  0x8a   : > { %v920_v53 = vsel %vm528_vm0, %v2428_v61, %v919_v47  ;;  %v922_v19 = vsel %vm528_vm0, %v919_v47, %v921_v56 }
  0x96   : > { %982 = vmatmul.bf16.vlgmr.msra.gmra.mxu1 %v918_v17  ;;  %1369 = vmatmul.bf16.vlgmr.msra.gmra.mxu0 %v2393_v10  ;;  %v1309_v10 = vsel %vm528_vm0, %v1306_v52, %v1308_v54 }
  0x98   : > { %1232 = vmatmul.bf16.gmra.mxu2 %v1046_v25  ;;  %1256 = vmatmul.bf16.gmra.mxu3 %v1080_v49 }
  0xa6   : > { %987 = vmatmul.bf16.gmra.mxu1 %v920_v53  ;;  %1374 = vmatmul.bf16.gmra.mxu0 %v1307_v55 }
  0xa8   : > { %1379 = vmatmul.bf16.vlgmr.msra.gmra.mxu2 %v1309_v10 }
  0xb6   : > { %992 = vmatmul.bf16.gmra.mxu1 %v922_v19 }
  0xc3   : > { %v460_v26 = vpop.f32.mrf.mxu0  ;;  %v2468_v59 = vpop.f32.mrf.mxu1 }
  0xcb   : > { %v596_v57 = vpop.f32.mrf.mxu2  ;;  %v462_v58 = vpop.f32.mrf.mxu0 }
  0xcc   : > { %v836_v37 = vpop.f32.mrf.mxu3  ;;  %v2470_v63 = vpop.f32.mrf.mxu1 }
  0xd3   : > { %v598_v60 = vpop.f32.mrf.mxu2  ;;  %v465_v61 = vpop.f32.mrf.mxu0 }
  0xd4   : > { %v838_v62 = vpop.f32.mrf.mxu3 }
  0xdb   : > { %v601_v3 = vpop.f32.mrf.mxu2  ;;  %v467_v0 = vpop.f32.mrf.mxu0 }
  0xdc   : > { %v841_v1 = vpop.f32.mrf.mxu3 }
  0xe3   : > { %v484_v2 = vpop.f32.mrf.mxu1  ;;  %v603_v4 = vpop.f32.mrf.mxu2 }
  0xe4   : > { %v860_v17 = vpop.f32.mrf.mxu0  ;;  %v843_v18 = vpop.f32.mrf.mxu3  ;;  %v485_v25 = vadd.f32 %v484_v2, %v460_v26 }
  0xe5   : > { %v861_v30 = vadd.f32 %v860_v17, %v836_v37 }
  0xe6   : > { %v617_v29 = vadd.f32 %v596_v57, %v485_v25 }
  0xe8   : > { %v881_v33 = vadd.f32 %v861_v30, %v617_v29 }
  0xeb   : > { %v486_v22 = vpop.f32.mrf.mxu1  ;;  %v2472_v23 = vpop.f32.mrf.mxu2 }
  0xec   : > { %v862_v5 = vpop.f32.mrf.mxu0  ;;  %v2474_v7 = vpop.f32.mrf.mxu3  ;;  %v487_v32 = vadd.f32 %v486_v22, %v462_v58 }
  0xed   : > { %v863_v39 = vadd.f32 %v862_v5, %v838_v62 }
  0xee   : > { %v618_v38 = vadd.f32 %v598_v60, %v487_v32 }
  0xf0   : > { %v882_v48 = vadd.f32 %v863_v39, %v618_v38 }
  0xf3   : > { %v489_v8 = vpop.f32.mrf.mxu1  ;;  %v2476_v9 = vpop.f32.mrf.mxu2 }
  0xf4   : > { %v865_v11 = vpop.f32.mrf.mxu0  ;;  %v2478_v13 = vpop.f32.mrf.mxu3  ;;  %v490_v45 = vadd.f32 %v489_v8, %v465_v61 }
  0xf5   : > { %v866_v54 = vadd.f32 %v865_v11, %v841_v1 }
  0xf6   : > { %v619_v53 = vadd.f32 %v601_v3, %v490_v45 }
  0xf8   : > { %v883_v58 = vadd.f32 %v866_v54, %v619_v53 }
  0xfb   : > { %v491_v12 = vpop.f32.mrf.mxu1  ;;  %v1223_v14 = vpop.f32.mrf.mxu2 }
  0xfc   : > { %v867_v15 = vpop.f32.mrf.mxu0  ;;  %v1247_v24 = vpop.f32.mrf.mxu3  ;;  %v492_v26 = vadd.f32 %v491_v12, %v467_v0 }
  0xfd   : > { %v1248_v35 = vadd.f32 %v1247_v24, %v1223_v14  ;;  %v868_v1 = vadd.f32 %v867_v15, %v843_v18 }
  0xfe   : > { %v620_v3 = vadd.f32 %v603_v4, %v492_v26 }
 0x100   : > { %v884_v0 = vadd.f32 %v868_v1, %v620_v3 }
 0x103   : > { %v494_v16 = vpop.f32.mrf.mxu1  ;;  %v1225_v20 = vpop.f32.mrf.mxu2 }
 0x104   : > { %v870_v21 = vpop.f32.mrf.mxu0  ;;  %v1249_v6 = vpop.f32.mrf.mxu3  ;;  %v495_v8 = vadd.f32 %v494_v16, %v2468_v59 }
 0x105   : > { %v1250_v51 = vadd.f32 %v1249_v6, %v1225_v20  ;;  %v871_v4 = vadd.f32 %v870_v21, %v2474_v7 }
 0x10b   : > { %v2480_v27 = vpop.f32.mrf.mxu1  ;;  %v1228_v28 = vpop.f32.mrf.mxu2 }
 0x10c   : > { %v2482_v31 = vpop.f32.mrf.mxu0  ;;  %v1252_v49 = vpop.f32.mrf.mxu3  ;;  %v497_v59 = vadd.f32 %v2480_v27, %v2470_v63 }
 0x10d   : > { %v1253_v60 = vadd.f32 %v1252_v49, %v1228_v28  ;;  %v621_v28 = vadd.f32 %v2472_v23, %v495_v8  ;;  %v873_v21 = vadd.f32 %v2482_v31, %v2478_v13 }
 0x10e   : > { %v622_v7 = vadd.f32 %v2476_v9, %v497_v59 }
 0x10f   : > { %v885_v6 = vadd.f32 %v871_v4, %v621_v28 }
 0x110   : > { %v886_v27 = vadd.f32 %v873_v21, %v622_v7 }
 0x113   : > { %v983_v34 = vpop.f32.mrf.mxu1  ;;  %v1230_v43 = vpop.f32.mrf.mxu2 }
 0x114   : > { %v1004_v36 = vadd.f32 %v983_v34, %v881_v33  ;;  %v1370_v41 = vpop.f32.mrf.mxu0  ;;  %v1254_v2 = vpop.f32.mrf.mxu3 }
 0x115   : > { %v1255_v20 = vadd.f32 %v1254_v2, %v1230_v43 }
 0x116   : > { %v1268_v40 = vadd.f32 %v1248_v35, %v1004_v36 }
 0x118   : > { %v1391_v44 = vadd.f32 %v1370_v41, %v1268_v40 }
 0x11a   : > { %v1413_v46 = vadd.f32 %v2487_v42, %v1391_v44 }
 0x11b   : > { %v985_v50 = vpop.f32.mrf.mxu1  ;;  %v1233_v19 = vpop.f32.mrf.mxu2 }
 0x11c   : > { %v1419_v47 = vmax.f32 %v1413_v46, 0.0  ;;  %v1005_v52 = vadd.f32 %v985_v50, %v882_v48  ;;  %v1372_v10 = vpop.f32.mrf.mxu0  ;;  %v1257_v29 = vpop.f32.mrf.mxu3 }
 0x11d   : > { %v1258_v33 = vadd.f32 %v1257_v29, %v1233_v19 }
 0x11e   : > { %1425 = vst [vmem:[%s2491_s9] sm:$0xff] %v1419_v47  ;;  %v1269_v55 = vadd.f32 %v1250_v51, %v1005_v52 }
 0x120   : > { %v1392_v56 = vadd.f32 %v1372_v10, %v1269_v55 }
 0x122   : > { %v1414_v57 = vadd.f32 %v2487_v42, %v1392_v56 }
 0x123   : > { %v988_v37 = vpop.f32.mrf.mxu1  ;;  %v1235_v12 = vpop.f32.mrf.mxu2 }
 0x124   : > { %v1420_v61 = vmax.f32 %v1414_v57, 0.0  ;;  %v1006_v62 = vadd.f32 %v988_v37, %v883_v58  ;;  %v1375_v22 = vpop.f32.mrf.mxu0  ;;  %v1259_v39 = vpop.f32.mrf.mxu3 }
 0x125   : > { %v1260_v41 = vadd.f32 %v1259_v39, %v1235_v12 }
 0x126   : > { %1426 = vst [vmem:[%s2491_s9 + $0x8] sm:$0xff] %v1420_v61  ;;  %v1270_v17 = vadd.f32 %v1253_v60, %v1006_v62 }
 0x128   : > { %v1393_v5 = vadd.f32 %v1375_v22, %v1270_v17 }
 0x12a   : > { %v1415_v11 = vadd.f32 %v2487_v42, %v1393_v5 }
 0x12b   : > { %v990_v14 = vpop.f32.mrf.mxu1  ;;  %v1380_v23 = vpop.f32.mrf.mxu2 }
 0x12c   : > { %v1421_v24 = vmax.f32 %v1415_v11, 0.0  ;;  %v1007_v25 = vadd.f32 %v990_v14, %v884_v0  ;;  %v1377_v15 = vpop.f32.mrf.mxu0 }
 0x12e   : > { %1427 = vst [vmem:[%s2491_s9 + $0x10] sm:$0xff] %v1421_v24  ;;  %v1271_v18 = vadd.f32 %v1255_v20, %v1007_v25 }
 0x130   : > { %v1394_v30 = vadd.f32 %v1377_v15, %v1271_v18 }
 0x132   : > { %v1416_v16 = vadd.f32 %v2487_v42, %v1394_v30 }
 0x133   : > { %v993_v32 = vpop.f32.mrf.mxu1  ;;  %v1382_v13 = vpop.f32.mrf.mxu2 }
 0x134   : > { %v1422_v34 = vmax.f32 %v1416_v16, 0.0  ;;  %v1008_v35 = vadd.f32 %v993_v32, %v885_v6 }
 0x136   : > { %1428 = vst [vmem:[%s2491_s9 + $0x18] sm:$0xff] %v1422_v34  ;;  %v1272_v36 = vadd.f32 %v1258_v33, %v1008_v35 }
 0x138   : > { %v1395_v38 = vadd.f32 %v1380_v23, %v1272_v36 }
 0x13a   : > { %v1417_v63 = vadd.f32 %v2487_v42, %v1395_v38 }
 0x13b   : > { %v995_v40 = vpop.f32.mrf.mxu1 }
 0x13c   : > { %v1423_v43 = vmax.f32 %v1417_v63, 0.0  ;;  %v1009_v44 = vadd.f32 %v995_v40, %v886_v27 }
 0x13e   : > { %1429 = vst [vmem:[%s2491_s9 + $0x20] sm:$0xff] %v1423_v43  ;;  %v1273_v9 = vadd.f32 %v1260_v41, %v1009_v44 }
 0x140   : > { %v1396_v31 = vadd.f32 %v1382_v13, %v1273_v9 }
 0x142   : > { %v1418_v45 = vadd.f32 %v2487_v42, %v1396_v31 }
 0x144   : > { %v1424_v46 = vmax.f32 %v1418_v45, 0.0 }
 0x146   : > { %1430 = vst [vmem:[%s2491_s9 + $0x28] sm:$0xff] %v1424_v46 }
 0x147   : > { %2144 = shalt.err (!%p2141_p0)
}
 0x148   : > { %s2210_s6 = smov 128   ;;  %s2211_s22 = smov 8  }
 0x149   : > { %1983 = dma.vmem_to_hbm [thread:$0]  (%p2307_p5), %s1448_s28, 768, %s1450_s15, %s1432_s21, %s2210_s6, %s2210_s6, %s2211_s22  }
 0x14a PF: > { %s1464_s27 = sand.u32 1, %s2183_s12   ;;  %p1994_p3 = pnand %p1575_p11, %p2281_p6 }
 0x14b   : > { %s1465_s9 = scalar_lea.sflag [#allocation5], %s1464_s27 }
 0x14c   : > { %p1995_p7 = pneg %p1994_p3 }
 0x14e   : > { %2178 = dma.done.wait (%p1995_p7), %s1465_s9, 768  }
 0x14f   : > { %2180 = vsyncadd (%p1995_p7), %s1465_s9, 4294966528  ;;  %s20_s17 = sadd.s32 1, %s2203_s17   ;;  %s2561_s12 = smov %s2187_s13 }
 0x150   : > { %p17_p9 = scmp.ge.s32.totalorder %s20_s17, 4   ;;  %s2562_s13 = smov %s2191_s14 }
 0x151   : > { %s2563_s14 = smov %s2316_s11  ;;  %s2564_s15 = smov %s2199_s16 }
 0x152   : > { %s2565_s16 = smov %s2567_s5  ;;  %19 = sbr.rel (!%p17_p9) target bundleno = 7 (0x7), region = 96 }
 0x157   :  { %1471 = vsyncpa [#allocation4], 1 }
 0x158   :  { %1473 = vsyncpa [#allocation4 + $0x1], 1 }
 0x159   :  { %1474 = vsyncpa [#allocation7], 1 }
 0x15a   :  { %1475 = vsyncpa [#allocation5], 1 }
 0x15b   :  { %1477 = vsyncpa [#allocation5 + $0x1], 1 }

</bundles_post_ra>
